<compile_context>
chip_gen: v7x
topology: tpu7x:2x2x1
jax: 0.10.0
libtpu: 0.0.40
codegen_flags: <defaults>
</compile_context>

<pallas_src>
import jax
import jax.numpy as jnp
from jax.experimental import pallas as pl
from jax.experimental.pallas import tpu as pltpu

LEAKY_SLOPE = 0.01   # nn.LeakyReLU() default
BN_EPS = 1e-5        # nn.BatchNorm1d default


def _round_up(v, m):
    return ((v + m - 1) // m) * m


def _cdiv(a, b):
    return -(-a // b)


def _leaky(x):
    # max-based LeakyReLU (valid for 0 < slope < 1): mul+max, no select.
    return jnp.maximum(x, LEAKY_SLOPE * x)


def _fold_bn(b, gamma, beta, mean, var):
    """Fold eval-mode BatchNorm into a per-channel (scale, bias) pair."""
    scale = gamma / jnp.sqrt(var + BN_EPS)
    bias = (b - mean) * scale + beta
    return scale[None, :].astype(jnp.float32), bias[None, :].astype(jnp.float32)


def prepare_weights(params, k):
    """Fold BN scales into bf16 matmul weights; pad to TPU-friendly shapes."""
    K_PAD = _round_up(max(k, 8), 8)          # input-channel pad (k=3 -> 8, k=64 -> 64)
    KK = k * k
    KK_PAD = _round_up(KK, 128)              # lane-dense head output

    s1, b1 = _fold_bn(params["b1"], *params["bn1"])
    s2, b2 = _fold_bn(params["b2"], *params["bn2"])
    s3, b3 = _fold_bn(params["b3"], *params["bn3"])
    fs1, fb1 = _fold_bn(params["fb1"], *params["bn4"])
    fs2, fb2 = _fold_bn(params["fb2"], *params["bn5"])

    wp = {
        # scale folded into the weight columns, then bf16 for the MXU
        "w1": jnp.pad(params["w1"] * s1, ((0, K_PAD - k), (0, 0))).astype(jnp.bfloat16),
        "b1": b1,                                            # (1, 64)  f32
        "w2": (params["w2"] * s2).astype(jnp.bfloat16),
        "b2": b2,                                            # (1, 128) f32
        "w3": (params["w3"] * s3).astype(jnp.bfloat16),
        "b3": b3.astype(jnp.bfloat16),                       # (1, 1024) bf16 epilogue
        "fw1": (params["fw1"] * fs1).astype(jnp.bfloat16),
        "fb1": fb1,                                          # (1, 512) f32
        "fw2": (params["fw2"] * fs2).astype(jnp.bfloat16),
        "fb2": fb2,                                          # (1, 256) f32
        "fw3": jnp.pad(params["fw3"], ((0, 0), (0, KK_PAD - KK))).astype(jnp.bfloat16),
        # "+ identity" folded into the last bias (identical for every row)
        "fb3": jnp.pad(params["fb3"] + jnp.eye(k, dtype=jnp.float32).reshape(KK),
                       (0, KK_PAD - KK))[None, :].astype(jnp.float32),
        "K_PAD": K_PAD, "KK": KK, "KK_PAD": KK_PAD,
    }
    return wp


# ---------------------------------------------------------------------------
# Kernel 1: point-wise MLP (k -> 64 -> 128 -> 1024) + running max over points
# ---------------------------------------------------------------------------
def point_feat_kernel(x_ref,
                      w1_ref, b1_ref,
                      w2_ref, b2_ref,
                      w3_ref, b3_ref,
                      feat_ref):
    nj = pl.program_id(2)

    @pl.when(nj == 0)
    def _init():
        feat_ref[...] = jnp.full(feat_ref.shape, -jnp.inf, dtype=feat_ref.dtype)

    x = x_ref[0]                                                # (TN, K_PAD) bf16

    h = jnp.dot(x, w1_ref[...], preferred_element_type=jnp.float32)
    h = _leaky(h + b1_ref[...])                                 # (TN, 64) f32

    h = jnp.dot(h.astype(jnp.bfloat16), w2_ref[...],
                preferred_element_type=jnp.float32)
    h = _leaky(h + b2_ref[...])                                 # (TN, 128) f32

    h = jnp.dot(h.astype(jnp.bfloat16), w3_ref[...],
                preferred_element_type=jnp.float32)
    # bf16 epilogue + reduction (halves VALU work / live bytes on v6e/v7x)
    h = h.astype(jnp.bfloat16)
    h = _leaky(h + b3_ref[...])                                 # (TN, 1024) bf16

    tn, c = h.shape
    # sublane-dense partial max: (TN, 1024) -> (8, 1024); no per-step 1-row
    # masked stores and no cross-sublane reduce to a single row here.
    part = jnp.max(h.reshape(tn // 8, 8, c), axis=0)            # (8, 1024) bf16
    feat_ref[...] = jnp.maximum(feat_ref[...],
                                part[None].astype(jnp.float32))


# ---------------------------------------------------------------------------
# Kernel 2: FC head (1024 -> 512 -> 256 -> k*k) batched over B
# ---------------------------------------------------------------------------
def head_kernel(feat_ref,
                fw1_ref, fb1_ref,
                fw2_ref, fb2_ref,
                fw3_ref, fb3_ref,
                out_ref):
    # finish the deferred (n_splits*8) -> 1 max-pool
    g = jnp.max(feat_ref[...], axis=1)                          # (B, 1024) f32

    f = jnp.dot(g.astype(jnp.bfloat16), fw1_ref[...],
                preferred_element_type=jnp.float32)
    f = _leaky(f + fb1_ref[...])                                # (B, 512)

    f = jnp.dot(f.astype(jnp.bfloat16), fw2_ref[...],
                preferred_element_type=jnp.float32)
    f = _leaky(f + fb2_ref[...])                                # (B, 256)

    out_ref[...] = (jnp.dot(f.astype(jnp.bfloat16), fw3_ref[...],
                            preferred_element_type=jnp.float32)
                    + fb3_ref[...])                             # (B, KK_PAD)


# ---------------------------------------------------------------------------
# Parameters (matching STNkd.__init__ shapes) and wrapper
# ---------------------------------------------------------------------------
def make_params(k, key):
    keys = jax.random.split(key, 32)
    it = iter(keys)

    def rnd(shape, scale=0.1):
        return (scale * jax.random.normal(next(it), shape)).astype(jnp.float32)

    def bn(c):
        gamma = 1.0 + 0.1 * jax.random.normal(next(it), (c,)).astype(jnp.float32)
        beta = 0.05 * jax.random.normal(next(it), (c,)).astype(jnp.float32)
        mean = 0.05 * jax.random.normal(next(it), (c,)).astype(jnp.float32)
        var = 0.5 + jax.random.uniform(next(it), (c,)).astype(jnp.float32)
        return gamma, beta, mean, var

    p = {}
    # Conv1d(k,64,1): torch weight (64,k,1) -> matmul weight (k,64), etc.
    p["w1"], p["b1"] = rnd((k, 64)), rnd((64,))
    p["bn1"] = bn(64)
    p["w2"], p["b2"] = rnd((64, 128)), rnd((128,))
    p["bn2"] = bn(128)
    p["w3"], p["b3"] = rnd((128, 1024)), rnd((1024,))
    p["bn3"] = bn(1024)
    p["fw1"], p["fb1"] = rnd((1024, 512)), rnd((512,))
    p["bn4"] = bn(512)
    p["fw2"], p["fb2"] = rnd((512, 256)), rnd((256,))
    p["bn5"] = bn(256)
    p["fw3"], p["fb3"] = rnd((256, k * k)), rnd((k * k,))
    return p


def stnkd_forward(x_bkn, params, k):
    """x_bkn: (B, k, N) float32 — same layout as the PyTorch module input."""
    B, k_in, N = x_bkn.shape
    assert k_in == k

    wp = prepare_weights(params, k)
    K_PAD, KK, KK_PAD = wp["K_PAD"], wp["KK"], wp["KK_PAD"]

    # Points tiling: TN up to 2048 (multiple of 8).  For small/odd batches
    # also split the points range in two independent halves ("parallel" axis)
    # so both v7x TensorCores get work.
    MAX_TN = 2048
    n_splits = 2 if ((B < 4 or B % 2 == 1) and N >= 1024) else 1
    tiles_per_split = max(1, _cdiv(N, n_splits * MAX_TN))
    total_tiles = n_splits * tiles_per_split
    TN = _round_up(_cdiv(N, total_tiles), 8)
    N_PAD = TN * total_tiles

    # (B, k, N) -> (B, N, k) bf16, then ONE edge-mode pad.  Duplicated point
    # rows never change the max; padded channel columns hit zero rows of w1.
    x = jnp.transpose(x_bkn, (0, 2, 1)).astype(jnp.bfloat16)
    if N_PAD > N or K_PAD > k:
        x = jnp.pad(x, ((0, 0), (0, N_PAD - N), (0, K_PAD - k)), mode="edge")

    # ------------- kernel 1: pooled partials (B, n_splits*8, 1024) ----------
    def const_spec(a):
        nd = a.ndim
        return pl.BlockSpec(a.shape, lambda b, s, nj, _nd=nd: (0,) * _nd)

    feat_flops = 2 * B * N_PAD * (K_PAD * 64 + 64 * 128 + 128 * 1024)
    feat_bytes = (int(x.size) * 2
                  + sum(int(wp[n].size) * wp[n].dtype.itemsize
                        for n in ("w1", "b1", "w2", "b2", "w3", "b3"))
                  + B * n_splits * 8 * 1024 * 4)

    feat = pl.pallas_call(
        point_feat_kernel,
        out_shape=jax.ShapeDtypeStruct((B, n_splits * 8, 1024), jnp.float32),
        grid_spec=pltpu.PrefetchScalarGridSpec(
            num_scalar_prefetch=0,
            grid=(B, n_splits, tiles_per_split),
            in_specs=[
                pl.BlockSpec((1, TN, K_PAD),
                             lambda b, s, nj: (b, s * tiles_per_split + nj, 0)),
                const_spec(wp["w1"]), const_spec(wp["b1"]),
                const_spec(wp["w2"]), const_spec(wp["b2"]),
                const_spec(wp["w3"]), const_spec(wp["b3"]),
            ],
            out_specs=pl.BlockSpec((1, 8, 1024), lambda b, s, nj: (b, s, 0)),
        ),
        compiler_params=pltpu.CompilerParams(
            dimension_semantics=("parallel", "parallel", "arbitrary"),
            vmem_limit_bytes=48 * 1024 * 1024),
        cost_estimate=pl.CostEstimate(
            flops=int(feat_flops), transcendentals=0,
            bytes_accessed=int(feat_bytes)),
    )(x, wp["w1"], wp["b1"], wp["w2"], wp["b2"], wp["w3"], wp["b3"])

    # ---------------- kernel 2: FC head over the whole batch ----------------
    def whole(a):
        nd = a.ndim
        return pl.BlockSpec(a.shape, lambda i, _nd=nd: (0,) * _nd)

    head_flops = 2 * B * (1024 * 512 + 512 * 256 + 256 * KK_PAD)
    head_bytes = (int(feat.size) * 4
                  + sum(int(wp[n].size) * wp[n].dtype.itemsize
                        for n in ("fw1", "fb1", "fw2", "fb2", "fw3", "fb3"))
                  + B * KK_PAD * 4)

    out = pl.pallas_call(
        head_kernel,
        out_shape=jax.ShapeDtypeStruct((B, KK_PAD), jnp.float32),
        grid_spec=pltpu.PrefetchScalarGridSpec(
            num_scalar_prefetch=0,
            grid=(1,),
            in_specs=[whole(feat),
                      whole(wp["fw1"]), whole(wp["fb1"]),
                      whole(wp["fw2"]), whole(wp["fb2"]),
                      whole(wp["fw3"]), whole(wp["fb3"])],
            out_specs=pl.BlockSpec((B, KK_PAD), lambda i: (0, 0)),
        ),
        compiler_params=pltpu.CompilerParams(
            dimension_semantics=("arbitrary",),
            vmem_limit_bytes=48 * 1024 * 1024),
        cost_estimate=pl.CostEstimate(
            flops=int(head_flops), transcendentals=0,
            bytes_accessed=int(head_bytes)),
    )(feat, wp["fw1"], wp["fb1"], wp["fw2"], wp["fb2"], wp["fw3"], wp["fb3"])

    return out[:, :KK].reshape(B, k, k)


# ---------------------------------------------------------------------------
# References
# ---------------------------------------------------------------------------
def stnkd_reference(x_bkn, params, k):
    """Pure-f32 reference with the module's (eval-mode BN) semantics."""
    B = x_bkn.shape[0]
    x = jnp.transpose(x_bkn, (0, 2, 1)).astype(jnp.float32)     # (B, N, k)
    s1, b1 = _fold_bn(params["b1"], *params["bn1"])
    s2, b2 = _fold_bn(params["b2"], *params["bn2"])
    s3, b3 = _fold_bn(params["b3"], *params["bn3"])
    fs1, fb1 = _fold_bn(params["fb1"], *params["bn4"])
    fs2, fb2 = _fold_bn(params["fb2"], *params["bn5"])
    h = _leaky(x @ params["w1"] * s1 + b1)
    h = _leaky(h @ params["w2"] * s2 + b2)
    h = _leaky(h @ params["w3"] * s3 + b3)
    g = jnp.max(h, axis=1)                                      # (B, 1024)
    f = _leaky(g @ params["fw1"] * fs1 + fb1)
    f = _leaky(f @ params["fw2"] * fs2 + fb2)
    out = f @ params["fw3"] + params["fb3"]
    out = out + jnp.eye(k, dtype=jnp.float32).reshape(1, k * k)
    return out.reshape(B, k, k)


def stnkd_matched_ref(x_bkn, wp, k):
    """Pure-JAX model applying the SAME bf16 casts / folds as the kernels."""
    B = x_bkn.shape[0]
    K_PAD = wp["K_PAD"]
    x = jnp.transpose(x_bkn, (0, 2, 1)).astype(jnp.bfloat16)
    x = jnp.pad(x, ((0, 0), (0, 0), (0, K_PAD - k)))
    h = jnp.dot(x, wp["w1"], preferred_element_type=jnp.float32)
    h = _leaky(h + wp["b1"])
    h = jnp.dot(h.astype(jnp.bfloat16), wp["w2"], preferred_element_type=jnp.float32)
    h = _leaky(h + wp["b2"])
    h = jnp.dot(h.astype(jnp.bfloat16), wp["w3"], preferred_element_type=jnp.float32)
    h = _leaky(h.astype(jnp.bfloat16) + wp["b3"])               # bf16 epilogue
    g = jnp.max(h, axis=1).astype(jnp.float32)                  # (B, 1024)
    f = jnp.dot(g.astype(jnp.bfloat16), wp["fw1"], preferred_element_type=jnp.float32)
    f = _leaky(f + wp["fb1"])
    f = jnp.dot(f.astype(jnp.bfloat16), wp["fw2"], preferred_element_type=jnp.float32)
    f = _leaky(f + wp["fb2"])
    out = (jnp.dot(f.astype(jnp.bfloat16), wp["fw3"], preferred_element_type=jnp.float32)
           + wp["fb3"])
    return out[:, :wp["KK"]].reshape(B, k, k)


if __name__ == "__main__":
    key = jax.random.PRNGKey(0)
    # k=3 (input transform), k=64 (feature transform), and a larger-N k=3 case
    # that exercises the ragged edge-pad and the 2-way points split.
    for k, B, N in ((3, 2, 16), (64, 2, 16), (3, 1, 1100)):
        key, kx, kp = jax.random.split(key, 3)
        x = jax.random.normal(kx, (B, k, N), dtype=jnp.float32)
        params = make_params(k, kp)

        y = jax.block_until_ready(stnkd_forward(x, params, k))
        wp = prepare_weights(params, k)
        y_match = stnkd_matched_ref(x, wp, k)
        y_ref = stnkd_reference(x, params, k)

        assert y.shape == (B, k, k)
        assert bool(jnp.all(jnp.isfinite(y)))

        # (1) Kernel vs a pure-JAX model with identical bf16 casts: tight.
        err_match = float(jnp.max(jnp.abs(y - y_match)))
        assert err_match < 1e-2, f"k={k}: matched-precision err {err_match}"

        # (2) Kernel vs the pure-f32 module semantics: tolerance scaled to the
        # output magnitude (bf16 MXU inputs over 6 chained matmuls).
        scale = float(jnp.maximum(jnp.max(jnp.abs(y_ref)), 1.0))
        err_f32 = float(jnp.max(jnp.abs(y - y_ref)))
        assert err_f32 < 0.08 * scale, (
            f"k={k}: f32-ref err {err_f32} (scale {scale})")
    print("KERNEL_OK")
</pallas_src>

<mosaic_0001>
module attributes {stable_mosaic.version = 11 : i64} {
  func.func @point_feat_kernel(%arg0: i32, %arg1: i32, %arg2: i32, %arg3: memref<1x16x8xbf16, #tpu.memory_space<vmem>>, %arg4: memref<8x64xbf16, #tpu.memory_space<vmem>>, %arg5: memref<1x64xf32, #tpu.memory_space<vmem>>, %arg6: memref<64x128xbf16, #tpu.memory_space<vmem>>, %arg7: memref<1x128xf32, #tpu.memory_space<vmem>>, %arg8: memref<128x1024xbf16, #tpu.memory_space<vmem>>, %arg9: memref<1x1024xbf16, #tpu.memory_space<vmem>>, %arg10: memref<1x8x1024xf32, #tpu.memory_space<vmem>>) attributes {dimension_semantics = [#tpu.dimension_semantics<parallel>, #tpu.dimension_semantics<parallel>, #tpu.dimension_semantics<arbitrary>], iteration_bounds = array<i64: 2, 1, 1>, scalar_prefetch = 0 : i64, scratch_operands = 0 : i64, tpu.core_type = #tpu.core_type<tc>, window_params = [{transform_indices = @transform_0, window_bounds = array<i64: 1, 16, 8>}, {pipeline_mode = #tpu.pipeline_mode<synchronous>, transform_indices = @transform_1, window_bounds = array<i64: 8, 64>}, {pipeline_mode = #tpu.pipeline_mode<synchronous>, transform_indices = @transform_2, window_bounds = array<i64: 1, 64>}, {pipeline_mode = #tpu.pipeline_mode<synchronous>, transform_indices = @transform_3, window_bounds = array<i64: 64, 128>}, {pipeline_mode = #tpu.pipeline_mode<synchronous>, transform_indices = @transform_4, window_bounds = array<i64: 1, 128>}, {pipeline_mode = #tpu.pipeline_mode<synchronous>, transform_indices = @transform_5, window_bounds = array<i64: 128, 1024>}, {pipeline_mode = #tpu.pipeline_mode<synchronous>, transform_indices = @transform_6, window_bounds = array<i64: 1, 1024>}, {transform_indices = @transform_7, window_bounds = array<i64: 1, 8, 1024>}]} {
    %c0_i32 = arith.constant 0 : i32
    %0 = arith.cmpi eq, %arg2, %c0_i32 : i32
    %1 = arith.extui %0 : i1 to i32
    %c0_i32_0 = arith.constant 0 : i32
    %2 = arith.cmpi ne, %1, %c0_i32_0 : i32
    scf.if %2 {
      %cst_27 = arith.constant 0xFF800000 : f32
      %39 = vector.broadcast %cst_27 : f32 to vector<1x8x1024xf32>
      %c0_28 = arith.constant 0 : index
      %c0_29 = arith.constant 0 : index
      %c0_30 = arith.constant 0 : index
      %40 = vector.load %arg10[%c0_28, %c0_29, %c0_30] : memref<1x8x1024xf32, #tpu.memory_space<vmem>>, vector<1x8x1024xf32>
      tpu.vector_store %arg10[%c0_28, %c0_29, %c0_30], %39 {strides = array<i32>} : memref<1x8x1024xf32, #tpu.memory_space<vmem>>, vector<1x8x1024xf32>,
    } else {
    }
    %c0 = arith.constant 0 : index
    %c0_1 = arith.constant 0 : index
    %c0_2 = arith.constant 0 : index
    %3 = vector.load %arg3[%c0, %c0_1, %c0_2] : memref<1x16x8xbf16, #tpu.memory_space<vmem>>, vector<1x16x8xbf16>
    %4 = vector.shape_cast %3 : vector<1x16x8xbf16> to vector<16x8xbf16>
    %c0_3 = arith.constant 0 : index
    %c0_4 = arith.constant 0 : index
    %5 = vector.load %arg4[%c0_3, %c0_4] : memref<8x64xbf16, #tpu.memory_space<vmem>>, vector<8x64xbf16>
    %cst = arith.constant dense<0.000000e+00> : vector<16x64xf32>
    %6 = tpu.matmul %4, %5, %cst {dimension_numbers = #tpu.dot_dimension_numbers<[1], [0], [0], [1], [0, 0, 1, 1], [], []>} : vector<16x8xbf16>, vector<8x64xbf16>, vector<16x64xf32> -> vector<16x64xf32>
    %c0_5 = arith.constant 0 : index
    %c0_6 = arith.constant 0 : index
    %7 = vector.load %arg5[%c0_5, %c0_6] : memref<1x64xf32, #tpu.memory_space<vmem>>, vector<1x64xf32>
    %8 = vector.broadcast %7 : vector<1x64xf32> to vector<16x64xf32>
    %9 = arith.addf %6, %8 : vector<16x64xf32>
    %cst_7 = arith.constant 0.00999999977 : f32
    %10 = vector.broadcast %cst_7 : f32 to vector<16x64xf32>
    %11 = arith.mulf %10, %9 : vector<16x64xf32>
    %12 = arith.maximumf %9, %11 : vector<16x64xf32>
    %13 = arith.truncf %12 : vector<16x64xf32> to vector<16x64xbf16>
    %c0_8 = arith.constant 0 : index
    %c0_9 = arith.constant 0 : index
    %14 = vector.load %arg6[%c0_8, %c0_9] : memref<64x128xbf16, #tpu.memory_space<vmem>>, vector<64x128xbf16>
    %cst_10 = arith.constant dense<0.000000e+00> : vector<16x128xf32>
    %15 = tpu.matmul %13, %14, %cst_10 {dimension_numbers = #tpu.dot_dimension_numbers<[1], [0], [0], [1], [0, 0, 1, 1], [], []>} : vector<16x64xbf16>, vector<64x128xbf16>, vector<16x128xf32> -> vector<16x128xf32>
    %c0_11 = arith.constant 0 : index
    %c0_12 = arith.constant 0 : index
    %16 = vector.load %arg7[%c0_11, %c0_12] : memref<1x128xf32, #tpu.memory_space<vmem>>, vector<1x128xf32>
    %17 = vector.broadcast %16 : vector<1x128xf32> to vector<16x128xf32>
    %18 = arith.addf %15, %17 : vector<16x128xf32>
    %cst_13 = arith.constant 0.00999999977 : f32
    %19 = vector.broadcast %cst_13 : f32 to vector<16x128xf32>
    %20 = arith.mulf %19, %18 : vector<16x128xf32>
    %21 = arith.maximumf %18, %20 : vector<16x128xf32>
    %22 = arith.truncf %21 : vector<16x128xf32> to vector<16x128xbf16>
    %c0_14 = arith.constant 0 : index
    %c0_15 = arith.constant 0 : index
    %23 = vector.load %arg8[%c0_14, %c0_15] : memref<128x1024xbf16, #tpu.memory_space<vmem>>, vector<128x1024xbf16>
    %cst_16 = arith.constant dense<0.000000e+00> : vector<16x1024xf32>
    %24 = tpu.matmul %22, %23, %cst_16 {dimension_numbers = #tpu.dot_dimension_numbers<[1], [0], [0], [1], [0, 0, 1, 1], [], []>} : vector<16x128xbf16>, vector<128x1024xbf16>, vector<16x1024xf32> -> vector<16x1024xf32>
    %25 = arith.truncf %24 : vector<16x1024xf32> to vector<16x1024xbf16>
    %c0_17 = arith.constant 0 : index
    %c0_18 = arith.constant 0 : index
    %26 = vector.load %arg9[%c0_17, %c0_18] : memref<1x1024xbf16, #tpu.memory_space<vmem>>, vector<1x1024xbf16>
    %27 = vector.broadcast %26 : vector<1x1024xbf16> to vector<16x1024xbf16>
    %28 = arith.addf %25, %27 : vector<16x1024xbf16>
    %cst_19 = arith.constant 1.000980e-02 : bf16
    %29 = vector.broadcast %cst_19 : bf16 to vector<16x1024xbf16>
    %30 = arith.mulf %29, %28 : vector<16x1024xbf16>
    %31 = arith.maximumf %28, %30 : vector<16x1024xbf16>
    %32 = vector.shape_cast %31 : vector<16x1024xbf16> to vector<2x8x1024xbf16>
    %cst_20 = arith.constant dense<0xFF80> : vector<8x1024xbf16>
    %33 = vector.multi_reduction <maximumf>, %32, %cst_20 [0] : vector<2x8x1024xbf16> to vector<8x1024xbf16>
    %c0_21 = arith.constant 0 : index
    %c0_22 = arith.constant 0 : index
    %c0_23 = arith.constant 0 : index
    %34 = vector.load %arg10[%c0_21, %c0_22, %c0_23] : memref<1x8x1024xf32, #tpu.memory_space<vmem>>, vector<1x8x1024xf32>
    %35 = vector.shape_cast %33 : vector<8x1024xbf16> to vector<1x8x1024xbf16>
    %36 = arith.extf %35 : vector<1x8x1024xbf16> to vector<1x8x1024xf32>
    %37 = arith.maximumf %34, %36 : vector<1x8x1024xf32>
    %c0_24 = arith.constant 0 : index
    %c0_25 = arith.constant 0 : index
    %c0_26 = arith.constant 0 : index
    %38 = vector.load %arg10[%c0_24, %c0_25, %c0_26] : memref<1x8x1024xf32, #tpu.memory_space<vmem>>, vector<1x8x1024xf32>
    tpu.vector_store %arg10[%c0_24, %c0_25, %c0_26], %37 {strides = array<i32>} : memref<1x8x1024xf32, #tpu.memory_space<vmem>>, vector<1x8x1024xf32>,
    return
  }
  func.func @transform_0(%arg0: i32, %arg1: i32, %arg2: i32) -> (i32, i32, i32) {
    %c1_i32 = arith.constant 1 : i32
    %0 = arith.muli %arg1, %c1_i32 : i32
    %1 = arith.addi %0, %arg2 : i32
    %c0_i32 = arith.constant 0 : i32
    %c0_i32_0 = arith.constant 0 : i32
    return %arg0, %1, %c0_i32 : i32, i32, i32
  }
  func.func @transform_1(%arg0: i32, %arg1: i32, %arg2: i32) -> (i32, i32) {
    %c0_i32 = arith.constant 0 : i32
    %c0_i32_0 = arith.constant 0 : i32
    %c0_i32_1 = arith.constant 0 : i32
    return %c0_i32, %c0_i32_0 : i32, i32
  }
  func.func @transform_2(%arg0: i32, %arg1: i32, %arg2: i32) -> (i32, i32) {
    %c0_i32 = arith.constant 0 : i32
    %c0_i32_0 = arith.constant 0 : i32
    %c0_i32_1 = arith.constant 0 : i32
    return %c0_i32, %c0_i32_0 : i32, i32
  }
  func.func @transform_3(%arg0: i32, %arg1: i32, %arg2: i32) -> (i32, i32) {
    %c0_i32 = arith.constant 0 : i32
    %c0_i32_0 = arith.constant 0 : i32
    %c0_i32_1 = arith.constant 0 : i32
    return %c0_i32, %c0_i32_0 : i32, i32
  }
  func.func @transform_4(%arg0: i32, %arg1: i32, %arg2: i32) -> (i32, i32) {
    %c0_i32 = arith.constant 0 : i32
    %c0_i32_0 = arith.constant 0 : i32
    %c0_i32_1 = arith.constant 0 : i32
    return %c0_i32, %c0_i32_0 : i32, i32
  }
  func.func @transform_5(%arg0: i32, %arg1: i32, %arg2: i32) -> (i32, i32) {
    %c0_i32 = arith.constant 0 : i32
    %c0_i32_0 = arith.constant 0 : i32
    %c0_i32_1 = arith.constant 0 : i32
    return %c0_i32, %c0_i32_0 : i32, i32
  }
  func.func @transform_6(%arg0: i32, %arg1: i32, %arg2: i32) -> (i32, i32) {
    %c0_i32 = arith.constant 0 : i32
    %c0_i32_0 = arith.constant 0 : i32
    %c0_i32_1 = arith.constant 0 : i32
    return %c0_i32, %c0_i32_0 : i32, i32
  }
  func.func @transform_7(%arg0: i32, %arg1: i32, %arg2: i32) -> (i32, i32, i32) {
    %c0_i32 = arith.constant 0 : i32
    %c0_i32_0 = arith.constant 0 : i32
    return %arg0, %arg1, %c0_i32 : i32, i32, i32
  }
}

</mosaic_0001>

<bundles_post_ra>
// kernel: tpu_custom_call.1
= control target key start
LH: loop header
LB: loop body
LE: loop exit
PB: predicated region body
PF: predicated region fallthrough
CT: control target
= control target key end

     0   :  { %12 = vsyncpa [#allocation3], 0  ;;  %s2056_s0 = inlined_call_operand.vmem [shape: bf16[2,16,8], index: 0, kind: input, shape index: {}]   ;;  %s2057_s1 = inlined_call_operand.hbm [shape: bf16[8,64], index: 1, kind: input, shape index: {}]   ;;  %s2058_s2 = inlined_call_operand.vmem [shape: f32[1,64], index: 2, kind: input, shape index: {}]   ;;  %s2059_s3 = inlined_call_operand.vmem [shape: bf16[64,128], index: 3, kind: input, shape index: {}]   ;;  %s2060_s4 = inlined_call_operand.vmem [shape: f32[1,128], index: 4, kind: input, shape index: {}]   ;;  %s2061_s5 = inlined_call_operand.hbm [shape: bf16[128,1024], index: 5, kind: input, shape index: {}]   ;;  %s2062_s6 = inlined_call_operand.vmem [shape: bf16[1,1024], index: 6, kind: input, shape index: {}]   ;;  %s2063_s7 = inlined_call_operand.hbm [shape: f32[2,8,1024], index: 7, kind: output, shape index: {}]  }
   0x1   :  { %13 = vsyncpa [#allocation6], 0 }
   0x2   :  { %14 = vsyncpa [#allocation4], 0 }
   0x3   :  { %16 = vsyncpa [#allocation4 + $0x1], 0  ;;  %s1817_s24 = smov 0   ;;  %s1819_s25 = smov 0  }
   0x4   :  { %s1821_s26 = smov 0   ;;  %s1823_s27 = smov 0  }
   0x5   :  { %s1825_s28 = smov 0   ;;  %s1827_s29 = smov 0  }
   0x6 LB: > { %s1410_s30 = sadd.s32 4294967295, %s1766_s29   ;;  %s1411_s8 = sadd.s32 4294967294, %s1766_s29   ;;  %s1766_s29 = sphi %s1827_s29, %s22_s29   ;;  %s1762_s28 = sphi %s1825_s28, %s2084_s28   ;;  %s1758_s27 = sphi %s1823_s27, %s2083_s27   ;;  %s1754_s26 = sphi %s1821_s26, %s2082_s26   ;;  %s1750_s25 = sphi %s1819_s25, %s2081_s25   ;;  %s1746_s24 = sphi %s1817_s24, %s2080_s24  }
   0x7   : > { %s41_s9 = sadd.s32 1, %s1762_s28  ;;  %s206_s10 = sadd.s32 1, %s1754_s26 }
   0x8   : > { %p43_p0 = scmp.ge.s32.totalorder %s41_s9, 2  ;;  %p216_p1 = scmp.ne.s32.totalorder %s1754_s26, %s1750_s25 }
   0x9   : > { %p217_p2 = scmp.eq.s32.totalorder %s1410_s30, 1  ;;  %p222_p3 = scmp.ne.s32.totalorder %s1750_s25, %s1746_s24 }
   0xa   : > { %s2086_s9 = smov (%p43_p0, %s41_s9), 0  ;;  %p223_p5 = scmp.eq.s32.totalorder %s1411_s8, 1 }
   0xb   : > { %2069 = sst [smem:[#allocation11_spill]] %s2086_s9  ;;  %p1857_p4 = por %p217_p2, %p216_p1 }
   0xc   : > { %s201_s12 = ssub.s32 %s1762_s28, %s2086_s9  ;;  %p1412_p6 = scmp.ge.s32.totalorder %s1766_s29, 1 }
   0xd   : > { %s2070_s11 = scalar_select %p1857_p4, 1, 0 }
   0xe   : > { %p204_p7 = scmp.eq.s32.totalorder %s201_s12, 0  ;;  %p1864_p8 = por %p223_p5, %p222_p3 }
   0xf   : > { %p230_p9 = scmp.lt.s32.totalorder %s1766_s29, 3  ;;  %p1876_p11 = scmp.eq.s32.totalorder %s1410_s30, 0 }
  0x10   : > { %s2071_s13 = scalar_select %p1864_p8, 1, 0 }
  0x11   : > { %s1870_s14 = scalar_select %p204_p7, %s1754_s26, %s206_s10  }
  0x12   : > { %p1872_p10 = pnand %p1412_p6, %p230_p9  ;;  %s1768_s17 = smov [#allocation2]  }
  0x13   : > { %s2073_s16 = scalar_select %p1876_p11, 1, 0 }
  0x14   : > { %s2072_s15 = scalar_select %p1872_p10, 1, 0 }
  0x15   : > { %p1545_p12 = pneg %p1872_p10  ;;  %s243_s18 = sshll.u32 %s1768_s17, 4  ;;  %s244_s18 = int_to_ptr.vmem [resolvable:$true] %s243_s18 }
  0x16   : > { %s1769_s19 = smov [#allocation5]   ;;  %s1624_s30 = scalar_lea.hbm %s2057_s1, 64 }
  0x17   : > { %s262_s20 = sshll.u32 %s1769_s19, 4  ;;  %p1884_p13 = pnand %p1876_p11, %p1545_p12  ;;  %s1888_s20 = int_to_ptr.vmem [resolvable:$true] %s262_s20 }
  0x18   : > { %p1625_p0 = scmp.ne.s32.totalorder %s2057_s1, %s1624_s30  ;;  %p1631_p5 = scmp.lt.u32.totalorder %s1624_s30, %s2057_s1 }
  0x19   : > { %p1626_p1 = pneg %p1884_p13 }
  0x1b   : > { %p1627_p2 = pnand %p1626_p1, %p1625_p0 }
  0x1d   : > { %p1628_p3 = pneg %p1627_p2 }
  0x1f   : > { %p1633_p6 = pnand %p1631_p5, %p1628_p3 }
  0x21   : > { %1636 = shalt.err (!%p1633_p6)
}
  0x22   : > { %s1637_s19 = scalar_lea.vmem %s244_s18, 64  ;;  %p1645_p8 = scmp.lt.s32.totalorder %s244_s18, %s244_s18 }
  0x23   : > { %p1638_p7 = scmp.ne.s32.totalorder %s244_s18, %s1637_s19  ;;  %p1646_p4 = scmp.lt.s32.totalorder %s1637_s19, %s1637_s19 }
  0x25   : > { %p1640_p9 = pnand %p1638_p7, %p1626_p1  ;;  %p1647_p11 = por %p1646_p4, %p1645_p8 }
  0x27   : > { %p1641_p12 = pneg %p1640_p9 }
  0x29   : > { %p1648_p10 = pnand %p1647_p11, %p1641_p12 }
  0x2b   : > { %1651 = shalt.err (!%p1648_p10)
}
  0x2c   : > { %1548 = dma.hbm_to_vmem [thread:$0]  (!%p1884_p13), %s2057_s1, 64, %s244_s18, [#allocation3]  }
  0x2d   : > { %s1652_s10 = scalar_lea.hbm %s2061_s5, 8192 }
  0x2e   : > { %p1653_p0 = scmp.ne.s32.totalorder %s2061_s5, %s1652_s10  ;;  %p1659_p10 = scmp.lt.u32.totalorder %s1652_s10, %s2061_s5 }
  0x30   : > { %p1655_p4 = pnand %p1653_p0, %p1626_p1 }
  0x32   : > { %p1656_p8 = pneg %p1655_p4 }
  0x34   : > { %p1661_p11 = pnand %p1659_p10, %p1656_p8 }
  0x36   : > { %1664 = shalt.err (!%p1661_p11)
}
  0x37   : > { %s1665_s18 = scalar_lea.vmem %s1888_s20, 8192  ;;  %p1673_p6 = scmp.lt.s32.totalorder %s1888_s20, %s1888_s20 }
  0x38   : > { %p1666_p2 = scmp.ne.s32.totalorder %s1888_s20, %s1665_s18  ;;  %p1674_p7 = scmp.lt.s32.totalorder %s1665_s18, %s1665_s18 }
  0x3a   : > { %p1668_p3 = pnand %p1666_p2, %p1626_p1  ;;  %p1675_p9 = por %p1674_p7, %p1673_p6 }
  0x3c   : > { %p1669_p5 = pneg %p1668_p3 }
  0x3e   : > { %p1676_p12 = pnand %p1675_p9, %p1669_p5 }
  0x40   : > { %1679 = shalt.err (!%p1676_p12)
}
  0x41   : > { %s1770_s9 = smov 512   ;;  %s1771_s22 = smov 32  }
  0x42   : > { %1551 = dma.hbm_to_vmem [thread:$0]  (!%p1884_p13), %s2061_s5, 8192, %s1888_s20, [#allocation6], %s1770_s9, %s1770_s9, %s1771_s22  }
  0x43   : > { %p2075_p0 = scmp.ne.s32.totalorder %s2072_s15, 0 }
  0x44   : > { %p2076_p1 = scmp.ne.s32.totalorder (!%p2075_p0), %s2073_s16, 0 }
  0x45   : > { %296 = sbr.rel (%p2075_p0) target bundleno = 806 (0x326), region = 48 }
  0x4c   : > { %1733 = dma.done.wait (%p2076_p1), [#allocation3], 64  }
  0x4d   : > { %1735 = vsyncadd (%p2076_p1), [#allocation3], 4294967232 }
  0x4e   : > { %1737 = dma.done.wait (%p2076_p1), [#allocation6], 8192  }
  0x4f   : > { %1739 = vsyncadd (%p2076_p1), [#allocation6], 4294959104  ;;  %p339_p4 = scmp.lt.s32.totalorder %s1758_s27, 1  ;;  %v1772_v0 = vmov 0.0   ;;  %vm1773_vm0 = vmmov 0   ;;  %vm382_vm1 = vcmask 1043456  }
  0x50   : > { %1517 = vmatprep.subr.bf16.mxu0 %v1772_v0  ;;  %1519 = vmatprep.mubr.msk.bf16.mxu0 %vm1773_vm0, %v1772_v0  ;;  %v365_v1 = vld [vmem:[#allocation2] sm:$0xf]  ;;  %vm378_vm2 = vcmask 64512   ;;  %v1619_v4 = vld [vmem:[%s2059_s3] sm:$0xff]   ;;  %v1621_v6 = vld [vmem:[%s2059_s3 + $0x10] sm:$0xff]   ;;  %vm471_vm3 = vcmask 523264  }
  0x51   : > { %s340_s15 = scalar_select %p339_p4, %s1758_s27, 1  ;;  %1523 = vmatprep.subr.bf16.mxu1 %v1772_v0  ;;  %1531 = vmatprep.mubr.msk.bf16.mxu1 %vm1773_vm0, %v1772_v0  ;;  %v384_v2 = vsel %vm382_vm1, %v365_v1, 0  ;;  %v1620_v5 = vld [vmem:[%s2059_s3 + $0x8] sm:$0xff]   ;;  %v1622_v7 = vld [vmem:[%s2059_s3 + $0x18] sm:$0xff]   ;;  %v1422_v36 = vld [vmem:[%s2058_s2] ss:$0 sm:$0xff] }
  0x52   : > { %1518 = vmatpush3.bf16.msra.mxu0 %v384_v2  ;;  %1524 = vmatpush3.bf16.msra.mxu1 %v1619_v4  ;;  %v521_v8 = vld [vmem:[#allocation5] sm:$0xff]  ;;  %v522_v10 = vld [vmem:[#allocation5 + $0x8] sm:$0xff]  ;;  %s334_s16 = sand.u32 1, %s1750_s25   ;;  %s1509_s19 = sshll.u32 %s1758_s27, 10 }
  0x53   : > { %s1508_s20 = sshll.u32 %s340_s15, 3  ;;  %1525 = vmatprep.subr.bf16.mxu1 %v1772_v0  ;;  %v525_v9 = vld [vmem:[#allocation5 + $0x20] sm:$0xff]  ;;  %v526_v13 = vld [vmem:[#allocation5 + $0x28] sm:$0xff]  ;;  %s1419_s12 = sshll.u32 %s334_s16, 6 }
  0x54   : > { %s346_s10 = scalar_lea.vmem %s2056_s0, %s1508_s20  ;;  %v1431_v11 = vcombine.low %v521_v8, %v525_v9  ;;  %v1432_v12 = vcombine.high %v521_v8, %v525_v9  ;;  %v529_v14 = vld [vmem:[#allocation5 + $0x40] sm:$0xff]  ;;  %v1433_v16 = vcombine.low %v522_v10, %v526_v13  ;;  %v1434_v17 = vcombine.high %v522_v10, %v526_v13  ;;  %v530_v45 = vld [vmem:[#allocation5 + $0x48] sm:$0xff]  ;;  %s1988_s17 = scalar_lea.vmem [#allocation7], %s1419_s12 }
  0x55   : > { %v1618_v3 = vld [vmem:[%s346_s10] sm:$0xff]   ;;  %v533_v15 = vld [vmem:[#allocation5 + $0x60] sm:$0xff]  ;;  %v534_v46 = vld [vmem:[#allocation5 + $0x68] sm:$0xff]  ;;  %s1309_s18 = sshll.u32 %s1988_s17, 4  ;;  %s2003_s23 = scalar_lea.hbm %s2063_s7, %s1509_s19  ;;  %s2005_s18 = int_to_ptr.vmem [resolvable:$true] %s1309_s18 }
  0x56   : > { %1520 = vmatmul.mubr.msk.bf16.vlgmr.msra.gmra.mrb[0].mxu0 %vm378_vm2, %v1618_v3  ;;  %1526 = vmatpush3.bf16.msra.mxu1 %v1620_v5  ;;  %v1440_v18 = vcombine.high %v529_v14, %v533_v15  ;;  %v1439_v19 = vcombine.low %v529_v14, %v533_v15  ;;  %v537_v20 = vld [vmem:[#allocation5 + $0x80] sm:$0xff]  ;;  %v1442_v50 = vcombine.high %v530_v45, %v534_v46  ;;  %v538_v51 = vld [vmem:[#allocation5 + $0x88] sm:$0xff]  ;;  %s1293_s27 = scalar_lea.sflag [#allocation4], %s334_s16  ;;  %s1680_s30 = scalar_lea.vmem %s2005_s18, 1024 }
  0x57   : > { %1527 = vmatprep.subr.bf16.mxu1 %v1772_v0  ;;  %905 = vmatprep.subr.bf16.mxu0 %v1432_v12  ;;  %v541_v21 = vld [vmem:[#allocation5 + $0xa0] sm:$0xff]  ;;  %v542_v52 = vld [vmem:[#allocation5 + $0xa8] sm:$0xff]  ;;  %v1441_v53 = vcombine.low %v530_v45, %v534_v46  ;;  %p1681_p13 = scmp.ne.s32.totalorder %s2005_s18, %s1680_s30  ;;  %p2077_p8 = scmp.ne.s32.totalorder %s2070_s11, 0 }
  0x58   : > { %906 = vmatpush1.bf16.msra.mxu0 %v1431_v11  ;;  %v1448_v22 = vcombine.high %v537_v20, %v541_v21  ;;  %v1447_v23 = vcombine.low %v537_v20, %v541_v21  ;;  %v545_v24 = vld [vmem:[#allocation5 + $0xc0] sm:$0xff]  ;;  %v1450_v54 = vcombine.high %v538_v51, %v542_v52  ;;  %v546_v55 = vld [vmem:[#allocation5 + $0xc8] sm:$0xff]  ;;  %v1449_v57 = vcombine.low %v538_v51, %v542_v52  ;;  %v523_v20 = vld [vmem:[#allocation5 + $0x10] sm:$0xff]  ;;  %s1776_s15 = smov [#allocation7]  }
  0x59   : > { %907 = vmatprep.subr.bf16.mxu0 %v1440_v18  ;;  %v549_v25 = vld [vmem:[#allocation5 + $0xe0] sm:$0xff]  ;;  %v550_v56 = vld [vmem:[#allocation5 + $0xe8] sm:$0xff]  ;;  %v527_v21 = vld [vmem:[#allocation5 + $0x30] sm:$0xff]  ;;  %p1682_p10 = pnand %p1681_p13, %p2077_p8  ;;  %s1684_s20 = sshll.u32 %s1776_s15, 4  ;;  %s1685_s20 = int_to_ptr.vmem [resolvable:$false] %s1684_s20 }
  0x5a   : > { %1528 = vmatpush3.bf16.msra.mxu1 %v1621_v6  ;;  %v1456_v26 = vcombine.high %v545_v24, %v549_v25  ;;  %v1455_v27 = vcombine.low %v545_v24, %v549_v25  ;;  %v553_v28 = vld [vmem:[#allocation5 + $0x100] sm:$0xff]  ;;  %v1458_v58 = vcombine.high %v546_v55, %v550_v56  ;;  %v554_v59 = vld [vmem:[#allocation5 + $0x108] sm:$0xff]  ;;  %v1457_v61 = vcombine.low %v546_v55, %v550_v56  ;;  %v528_v24 = vld [vmem:[#allocation5 + $0x38] sm:$0xff]  ;;  %s1686_s21 = scalar_lea.vmem %s1685_s20, 2048  ;;  %p1687_p2 = scmp.lt.s32.totalorder %s2005_s18, %s1685_s20 }
  0x5b   : > { %1529 = vmatprep.subr.bf16.mxu1 %v1772_v0  ;;  %v557_v29 = vld [vmem:[#allocation5 + $0x120] sm:$0xff]  ;;  %v558_v60 = vld [vmem:[#allocation5 + $0x128] sm:$0xff]  ;;  %v1435_v25 = vcombine.low %v523_v20, %v527_v21  ;;  %v547_v55 = vld [vmem:[#allocation5 + $0xd0] sm:$0xff]  ;;  %p1683_p11 = pneg %p1682_p10  ;;  %p1688_p3 = scmp.lt.s32.totalorder %s1686_s21, %s1680_s30 }
  0x5c   : > { %908 = vmatpush1.bf16.msra.mxu0 %v1439_v19  ;;  %v1464_v30 = vcombine.high %v553_v28, %v557_v29  ;;  %v1463_v31 = vcombine.low %v553_v28, %v557_v29  ;;  %v561_v32 = vld [vmem:[#allocation5 + $0x140] sm:$0xff]  ;;  %v1466_v62 = vcombine.high %v554_v59, %v558_v60  ;;  %v562_v63 = vld [vmem:[#allocation5 + $0x148] sm:$0xff]  ;;  %v1465_v1 = vcombine.low %v554_v59, %v558_v60  ;;  %v1425_v29 = vld [vmem:[%s2060_s4] ss:$0 sm:$0xff] }
  0x5d   : > { %909 = vmatprep.subr.bf16.mxu0 %v1448_v22  ;;  %v565_v33 = vld [vmem:[#allocation5 + $0x160] sm:$0xff]  ;;  %v566_v0 = vld [vmem:[#allocation5 + $0x168] sm:$0xff]  ;;  %v524_v22 = vld [vmem:[#allocation5 + $0x18] sm:$0xff]  ;;  %v1774_v28 = vmov 0   ;;  %p1689_p5 = por %p1688_p3, %p1687_p2 }
  0x5e   : > { %1530 = vmatpush3.bf16.msra.mxu1 %v1622_v7  ;;  %v1472_v34 = vcombine.high %v561_v32, %v565_v33  ;;  %v1471_v35 = vcombine.low %v561_v32, %v565_v33  ;;  %v1474_v2 = vcombine.high %v562_v63, %v566_v0  ;;  %v1473_v3 = vcombine.low %v562_v63, %v566_v0  ;;  %v569_v4 = vld [vmem:[#allocation5 + $0x180] sm:$0xff]  ;;  %v570_v6 = vld [vmem:[#allocation5 + $0x188] sm:$0xff]  ;;  %v551_v56 = vld [vmem:[#allocation5 + $0xf0] sm:$0xff] }
  0x5f   : > { %948 = vmatprep.subr.bf16.mxu1 %v1434_v17  ;;  %v573_v5 = vld [vmem:[#allocation5 + $0x1a0] sm:$0xff]  ;;  %v574_v8 = vld [vmem:[#allocation5 + $0x1a8] sm:$0xff]  ;;  %937 = vmatprep.mubr.bf16.mxu0 %v1774_v28  ;;  %v555_v63 = vld [vmem:[#allocation5 + $0x110] sm:$0xff]  ;;  %p1690_p6 = pnand %p1689_p5, %p1683_p11 }
  0x60   : > { %910 = vmatpush1.bf16.msra.mxu0 %v1447_v23  ;;  %v1480_v7 = vcombine.high %v569_v4, %v573_v5  ;;  %v1479_v9 = vcombine.low %v569_v4, %v573_v5  ;;  %v1481_v10 = vcombine.low %v570_v6, %v574_v8  ;;  %v1482_v11 = vcombine.high %v570_v6, %v574_v8  ;;  %v577_v12 = vld [vmem:[#allocation5 + $0x1c0] sm:$0xff]  ;;  %v578_v14 = vld [vmem:[#allocation5 + $0x1c8] sm:$0xff]  ;;  %v559_v0 = vld [vmem:[#allocation5 + $0x130] sm:$0xff] }
  0x61   : > { %911 = vmatprep.subr.bf16.mxu0 %v1456_v26  ;;  %v581_v13 = vld [vmem:[#allocation5 + $0x1e0] sm:$0xff]  ;;  %v1436_v23 = vcombine.high %v523_v20, %v527_v21  ;;  %v1437_v26 = vcombine.low %v524_v22, %v528_v24  ;;  %v1468_v5 = vcombine.high %v555_v63, %v559_v0  ;;  %v567_v8 = vld [vmem:[#allocation5 + $0x170] sm:$0xff] }
  0x62   : > { %v1488_v15 = vcombine.high %v577_v12, %v581_v13  ;;  %v1487_v17 = vcombine.low %v577_v12, %v581_v13 }
  0x64   : > { %912 = vmatpush1.bf16.msra.mxu0 %v1455_v27  ;;  %v1438_v27 = vcombine.high %v524_v22, %v528_v24  ;;  %v583_v24 = vld [vmem:[#allocation5 + $0x1f0] sm:$0xff] }
  0x65   : > { %913 = vmatprep.subr.bf16.mxu0 %v1464_v30 }
  0x68   : > { %914 = vmatpush1.bf16.msra.mxu0 %v1463_v31 }
  0x69   : > { %915 = vmatprep.subr.bf16.mxu0 %v1472_v34 }
  0x6c   : > { %916 = vmatpush1.bf16.msra.mxu0 %v1471_v35 }
  0x6d   : > { %917 = vmatprep.subr.bf16.mxu0 %v1480_v7  ;;  %v563_v7 = vld [vmem:[#allocation5 + $0x150] sm:$0xff] }
  0x6e   : > { %v1476_v13 = vcombine.high %v563_v7, %v567_v8 }
  0x70   : > { %918 = vmatpush1.bf16.msra.mxu0 %v1479_v9  ;;  %v564_v9 = vld [vmem:[#allocation5 + $0x158] sm:$0xff] }
  0x71   : > { %919 = vmatprep.subr.bf16.mxu0 %v1488_v15  ;;  %v571_v15 = vld [vmem:[#allocation5 + $0x190] sm:$0xff] }
  0x74   : > { %920 = vmatpush1.bf16.msra.mxu0 %v1487_v17  ;;  %v572_v17 = vld [vmem:[#allocation5 + $0x198] sm:$0xff] }
  0x75   : > { %991 = vmatprep.subr.bf16.mxu0 %v1436_v23  ;;  %v579_v23 = vld [vmem:[#allocation5 + $0x1d0] sm:$0xff] }
 0x129   : > { %v420_v37 = vpop.f32.mrb[0].mxu0 }
 0x12a   : > { %v421_v38 = vadd.f32 %v1422_v36, %v420_v37  ;;  %v1521_v39 = vpop.f32.mrb[1].mxu0 }
 0x12b   : > { %v423_v40 = vpop.f32.mrb[2].mxu0  ;;  %v535_v39 = vld [vmem:[#allocation5 + $0x70] sm:$0xff] }
 0x12c   : > { %v427_v41 = vmul.f32 0.01, %v421_v38  ;;  %v424_v42 = vadd.f32 %v1422_v36, %v423_v40  ;;  %v1522_v43 = vpop.f32.mrb[3].mxu0  ;;  %v532_v40 = vld [vmem:[#allocation5 + $0x58] sm:$0xff] }
 0x12e   : > { %v428_v44 = vmul.f32 0.01, %v424_v42  ;;  %v429_v47 = vmax.f32 %v421_v38, %v427_v41  ;;  %v531_v38 = vld [vmem:[#allocation5 + $0x50] sm:$0xff]  ;;  %v536_v41 = vld [vmem:[#allocation5 + $0x78] sm:$0xff] }
 0x12f   : > { %v1444_v45 = vcombine.high %v531_v38, %v535_v39  ;;  %v1446_v46 = vcombine.high %v532_v40, %v536_v41  ;;  %v1443_v51 = vcombine.low %v531_v38, %v535_v39  ;;  %v1445_v52 = vcombine.low %v532_v40, %v536_v41  ;;  %v1085_v39 = vld [vmem:[%s2062_s6] sm:$0xff] }
 0x130   : > { %v430_v48 = vmax.f32 %v424_v42, %v428_v44 }
 0x132   : > { %v431_v49 = vpack.c.bf16 %v430_v48, %v429_v47  ;;  %v539_v47 = vld [vmem:[#allocation5 + $0x90] sm:$0xff] }
 0x133   : > { %v543_v48 = vld [vmem:[#allocation5 + $0xb0] sm:$0xff] }
 0x134   : > { %1532 = vmatmul.mubr.msk.bf16.vlgmr.msra.gmra.mrb[0].mxu1 %vm471_vm3, %v431_v49  ;;  %v540_v49 = vld [vmem:[#allocation5 + $0x98] sm:$0xff]  ;;  %v1451_v59 = vcombine.low %v539_v47, %v543_v48 }
 0x135   : > { %949 = vmatpush1.bf16.msra.mxu1 %v1433_v16  ;;  %v582_v16 = vld [vmem:[#allocation5 + $0x1e8] sm:$0xff]  ;;  %980 = vmatprep.mubr.bf16.mxu1 %v1774_v28 }
 0x136   : > { %950 = vmatprep.subr.bf16.mxu1 %v1442_v50  ;;  %v1489_v18 = vcombine.low %v578_v14, %v582_v16  ;;  %v1490_v19 = vcombine.high %v578_v14, %v582_v16  ;;  %v544_v50 = vld [vmem:[#allocation5 + $0xb8] sm:$0xff]  ;;  %v575_v16 = vld [vmem:[#allocation5 + $0x1b0] sm:$0xff] }
 0x137   : > { %v1453_v60 = vcombine.low %v540_v49, %v544_v50  ;;  %v1484_v21 = vcombine.high %v571_v15, %v575_v16 }
 0x139   : > { %951 = vmatpush1.bf16.msra.mxu1 %v1441_v53  ;;  %v1452_v53 = vcombine.high %v539_v47, %v543_v48 }
 0x13a   : > { %952 = vmatprep.subr.bf16.mxu1 %v1450_v54  ;;  %v1454_v54 = vcombine.high %v540_v49, %v544_v50 }
 0x13d   : > { %953 = vmatpush1.bf16.msra.mxu1 %v1449_v57  ;;  %v548_v57 = vld [vmem:[#allocation5 + $0xd8] sm:$0xff] }
 0x13e   : > { %954 = vmatprep.subr.bf16.mxu1 %v1458_v58  ;;  %v552_v58 = vld [vmem:[#allocation5 + $0xf8] sm:$0xff] }
 0x13f   : > { %v1461_v4 = vcombine.low %v548_v57, %v552_v58 }
 0x141   : > { %955 = vmatpush1.bf16.msra.mxu1 %v1457_v61  ;;  %v1460_v61 = vcombine.high %v547_v55, %v551_v56 }
 0x142   : > { %956 = vmatprep.subr.bf16.mxu1 %v1466_v62  ;;  %v1462_v62 = vcombine.high %v548_v57, %v552_v58 }
 0x145   : > { %957 = vmatpush1.bf16.msra.mxu1 %v1465_v1  ;;  %v556_v1 = vld [vmem:[#allocation5 + $0x118] sm:$0xff] }
 0x146   : > { %958 = vmatprep.subr.bf16.mxu1 %v1474_v2  ;;  %v560_v2 = vld [vmem:[#allocation5 + $0x138] sm:$0xff] }
 0x147   : > { %v1470_v6 = vcombine.high %v556_v1, %v560_v2  ;;  %v1469_v12 = vcombine.low %v556_v1, %v560_v2 }
 0x149   : > { %959 = vmatpush1.bf16.msra.mxu1 %v1473_v3  ;;  %v1459_v3 = vcombine.low %v547_v55, %v551_v56 }
 0x14a   : > { %960 = vmatprep.subr.bf16.mxu1 %v1482_v11  ;;  %v1467_v11 = vcombine.low %v555_v63, %v559_v0 }
 0x14d   : > { %961 = vmatpush1.bf16.msra.mxu1 %v1481_v10  ;;  %v568_v10 = vld [vmem:[#allocation5 + $0x178] sm:$0xff] }
 0x14e   : > { %962 = vmatprep.subr.bf16.mxu1 %v1490_v19  ;;  %v1478_v14 = vcombine.high %v564_v9, %v568_v10  ;;  %v1475_v19 = vcombine.low %v563_v7, %v567_v8  ;;  %v1477_v20 = vcombine.low %v564_v9, %v568_v10 }
 0x151   : > { %963 = vmatpush1.bf16.msra.mxu1 %v1489_v18  ;;  %v576_v18 = vld [vmem:[#allocation5 + $0x1b8] sm:$0xff] }
 0x152   : > { %1034 = vmatprep.subr.bf16.mxu1 %v1438_v27  ;;  %v1486_v22 = vcombine.high %v572_v17, %v576_v18  ;;  %v1483_v27 = vcombine.low %v571_v15, %v575_v16 }
 0x207   : > { %v509_v30 = vpop.f32.mrb[0].mxu1 }
 0x208   : > { %v510_v31 = vadd.f32 %v1425_v29, %v509_v30  ;;  %v1533_v32 = vpop.f32.mrb[1].mxu1 }
 0x209   : > { %v512_v33 = vpop.f32.mrb[2].mxu1 }
 0x20a   : > { %v516_v34 = vmul.f32 0.01, %v510_v31  ;;  %v513_v35 = vadd.f32 %v1425_v29, %v512_v33  ;;  %v1534_v36 = vpop.f32.mrb[3].mxu1  ;;  %v1492_v29 = vcombine.high %v579_v23, %v583_v24  ;;  %v1775_v33 = vmov 1966171168  }
 0x20c   : > { %v517_v37 = vmul.f32 0.01, %v513_v35  ;;  %v518_v42 = vmax.f32 %v510_v31, %v516_v34  ;;  %v1491_v31 = vcombine.low %v579_v23, %v583_v24  ;;  %v1089_v34 = vunpack.c.l.s4 %v1775_v33 }
 0x20e   : > { %v519_v43 = vmax.f32 %v513_v35, %v517_v37  ;;  %v1091_v35 = vlaneseq  ;;  %v1090_v36 = vunpack.c.0.s8 %v1089_v34 }
 0x210   : > { %v1970_v44 = vpack.c.bf16 %v519_v43, %v518_v42  ;;  %v1092_v37 = vshrl.u32 %v1091_v35, 7 }
 0x212   : > { %938 = vmatmul.mubr.bf16.vlgmr.msra.gmra.mrb[4].mxu0 %v1970_v44  ;;  %981 = vmatmul.mubr.bf16.vlgmr.msra.gmra.mrb[4].mxu1 %v1970_v44  ;;  %v1093_v38 = vsub.s32 %v1090_v36, %v1092_v37  ;;  %v1979_v48 = vsub.s32 0, %v1092_v37 }
 0x213   : > { %992 = vmatpush1.bf16.msra.mxu0 %v1435_v25  ;;  %1035 = vmatpush1.bf16.msra.mxu1 %v1437_v26  ;;  %v580_v25 = vld [vmem:[#allocation5 + $0x1d8] sm:$0xff] }
 0x214   : > { %993 = vmatprep.subr.bf16.mxu0 %v1444_v45  ;;  %1036 = vmatprep.subr.bf16.mxu1 %v1446_v46  ;;  %v584_v26 = vld [vmem:[#allocation5 + $0x1f8] sm:$0xff]  ;;  %v1094_v40 = vrot.slane %v1085_v39, %v1093_v38 }
 0x215   : > { %1023 = vmatprep.mubr.bf16.mxu0 %v1774_v28  ;;  %1066 = vmatprep.mubr.bf16.mxu1 %v1774_v28  ;;  %v1485_v28 = vcombine.low %v572_v17, %v576_v18  ;;  %v1494_v30 = vcombine.high %v580_v25, %v584_v26  ;;  %v1493_v32 = vcombine.low %v580_v25, %v584_v26 }
 0x216   : > { %v1102_v41 = vcombine.high %v1094_v40, %v1094_v40  ;;  %v1110_v42 = vrot.slane %v1094_v40, %v1093_v38 }
 0x217   : > { %994 = vmatpush1.bf16.msra.mxu0 %v1443_v51  ;;  %1037 = vmatpush1.bf16.msra.mxu1 %v1445_v52 }
 0x218   : > { %995 = vmatprep.subr.bf16.mxu0 %v1452_v53  ;;  %1038 = vmatprep.subr.bf16.mxu1 %v1454_v54  ;;  %v1124_v43 = vrot.slane %v1102_v41, %v1093_v38  ;;  %v1132_v45 = vcombine.high %v1110_v42, %v1110_v42  ;;  %v1137_v47 = vpack.i.b16 %v1110_v42, %v1110_v42 }
 0x21a   : > { %v1134_v46 = vcombine.high %v1124_v43, %v1124_v43  ;;  %v1144_v49 = vpack.i.b16 %v1124_v43, %v1124_v43  ;;  %v1142_v55 = vrot.slane %v1137_v47, %v1979_v48 }
 0x21b   : > { %996 = vmatpush1.bf16.msra.mxu0 %v1451_v59  ;;  %1039 = vmatpush1.bf16.msra.mxu1 %v1453_v60 }
 0x21c   : > { %997 = vmatprep.subr.bf16.mxu0 %v1460_v61  ;;  %1040 = vmatprep.subr.bf16.mxu1 %v1462_v62  ;;  %v1158_v50 = vpack.i.b16 %v1134_v46, %v1134_v46  ;;  %v1149_v59 = vrot.slane %v1144_v49, %v1979_v48 }
 0x21e   : > { %v1163_v60 = vrot.slane %v1158_v50, %v1979_v48 }
 0x21f   : > { %998 = vmatpush1.bf16.msra.mxu0 %v1459_v3  ;;  %1041 = vmatpush1.bf16.msra.mxu1 %v1461_v4 }
 0x220   : > { %999 = vmatprep.subr.bf16.mxu0 %v1468_v5  ;;  %1042 = vmatprep.subr.bf16.mxu1 %v1470_v6 }
 0x223   : > { %1000 = vmatpush1.bf16.msra.mxu0 %v1467_v11  ;;  %1043 = vmatpush1.bf16.msra.mxu1 %v1469_v12 }
 0x224   : > { %1001 = vmatprep.subr.bf16.mxu0 %v1476_v13  ;;  %1044 = vmatprep.subr.bf16.mxu1 %v1478_v14  ;;  %v1087_v13 = vcombine.high %v1085_v39, %v1085_v39 }
 0x227   : > { %1002 = vmatpush1.bf16.msra.mxu0 %v1475_v19  ;;  %1045 = vmatpush1.bf16.msra.mxu1 %v1477_v20  ;;  %v1101_v20 = vrot.slane %v1087_v13, %v1093_v38 }
 0x228   : > { %1003 = vmatprep.subr.bf16.mxu0 %v1484_v21  ;;  %1046 = vmatprep.subr.bf16.mxu1 %v1486_v22 }
 0x22b   : > { %1004 = vmatpush1.bf16.msra.mxu0 %v1483_v27  ;;  %1047 = vmatpush1.bf16.msra.mxu1 %v1485_v28  ;;  %v1103_v27 = vcombine.high %v1101_v20, %v1101_v20  ;;  %v1117_v28 = vrot.slane %v1101_v20, %v1093_v38 }
 0x22c   : > { %1005 = vmatprep.subr.bf16.mxu0 %v1492_v29  ;;  %1048 = vmatprep.subr.bf16.mxu1 %v1494_v30 }
 0x22d   : > { %v1131_v29 = vrot.slane %v1103_v27, %v1093_v38  ;;  %v1133_v30 = vcombine.high %v1117_v28, %v1117_v28 }
 0x22f   : > { %1006 = vmatpush1.bf16.msra.mxu0 %v1491_v31  ;;  %1049 = vmatpush1.bf16.msra.mxu1 %v1493_v32  ;;  %v1135_v31 = vcombine.high %v1131_v29, %v1131_v29  ;;  %v1165_v32 = vpack.i.b16 %v1117_v28, %v1117_v28  ;;  %v1179_v33 = vpack.i.b16 %v1133_v30, %v1133_v30 }
 0x230   : > { %v1172_v34 = vpack.i.b16 %v1131_v29, %v1131_v29 }
 0x231   : > { %v1186_v35 = vpack.i.b16 %v1135_v31, %v1135_v31  ;;  %v1170_v41 = vrot.slane %v1165_v32, %v1979_v48  ;;  %v1184_v42 = vrot.slane %v1179_v33, %v1979_v48 }
 0x232   : > { %1024 = vmatmul.mubr.bf16.vlgmr.msra.gmra.mrb[8].mxu0 %v1970_v44  ;;  %1067 = vmatmul.mubr.bf16.vlgmr.msra.gmra.mrb[8].mxu1 %v1970_v44  ;;  %v1151_v44 = vpack.i.b16 %v1132_v45, %v1132_v45  ;;  %v1177_v46 = vrot.slane %v1172_v34, %v1979_v48 }
 0x233   : > { %v1191_v38 = vrot.slane %v1186_v35, %v1979_v48 }
 0x234   : > { %v1156_v56 = vrot.slane %v1151_v44, %v1979_v48 }
 0x2e5   : > { %v939_v51 = vpop.f32.mrb[4].mxu0  ;;  %v982_v52 = vpop.f32.mrb[4].mxu1 }
 0x2e6   : > { %v941_v53 = vpop.f32.mrb[5].mxu0  ;;  %v984_v54 = vpop.f32.mrb[5].mxu1 }
 0x2e7   : > { %v943_v57 = vpop.f32.mrb[6].mxu0  ;;  %v986_v58 = vpop.f32.mrb[6].mxu1 }
 0x2e8   : > { %v1077_v61 = vpack.c.bf16 %v943_v57, %v939_v51  ;;  %v1079_v62 = vpack.c.bf16 %v986_v58, %v982_v52  ;;  %v945_v63 = vpop.f32.mrb[7].mxu0  ;;  %v988_v0 = vpop.f32.mrb[7].mxu1 }
 0x2e9   : > { %v1078_v1 = vpack.c.bf16 %v945_v63, %v941_v53  ;;  %v1080_v2 = vpack.c.bf16 %v988_v0, %v984_v54 }
 0x2ea   : > { %v1192_v3 = vadd.bf16 %v1142_v55, %v1077_v61  ;;  %v1194_v4 = vadd.bf16 %v1156_v56, %v1079_v62 }
 0x2eb   : > { %v1193_v5 = vadd.bf16 %v1149_v59, %v1078_v1  ;;  %v1195_v6 = vadd.bf16 %v1163_v60, %v1080_v2 }
 0x2ec   : > { %v1200_v7 = vmul.bf16 1009007652, %v1192_v3  ;;  %v1202_v8 = vmul.bf16 1009007652, %v1194_v4 }
 0x2ed   : > { %v1201_v9 = vmul.bf16 1009007652, %v1193_v5  ;;  %v1203_v10 = vmul.bf16 1009007652, %v1195_v6 }
 0x2ee   : > { %v1208_v11 = vmax.bf16 %v1200_v7, %v1192_v3  ;;  %v1210_v12 = vmax.bf16 %v1202_v8, %v1194_v4 }
 0x2ef   : > { %v1209_v14 = vmax.bf16 %v1201_v9, %v1193_v5  ;;  %v1211_v15 = vmax.bf16 %v1203_v10, %v1195_v6 }
 0x2f1   : > { %v1495_v16 = vcombine.low %v1208_v11, %v1209_v14  ;;  %v1499_v17 = vcombine.high %v1208_v11, %v1209_v14  ;;  %v1496_v18 = vcombine.low %v1210_v12, %v1211_v15  ;;  %v1500_v19 = vcombine.high %v1210_v12, %v1211_v15 }
 0x2f3   : > { %v1256_v21 = vmax.bf16 %v1499_v17, %v1495_v16  ;;  %v1257_v22 = vmax.bf16 %v1500_v19, %v1496_v18 }
 0x2f5   : > { %v1268_v23 = vunpack.c.l.bf16 %v1256_v21  ;;  %v1269_v24 = vunpack.c.h.bf16 %v1256_v21  ;;  %v1270_v25 = vunpack.c.l.bf16 %v1257_v22  ;;  %v1271_v26 = vunpack.c.h.bf16 %v1257_v22 }
 0x2f7   : > { %1284 = vst [vmem:[%s1988_s17] sm:$0xff] %v1268_v23  ;;  %1285 = vst [vmem:[%s1988_s17 + $0x8] sm:$0xff] %v1269_v24 }
 0x2f8   : > { %1286 = vst [vmem:[%s1988_s17 + $0x10] sm:$0xff] %v1270_v25  ;;  %1287 = vst [vmem:[%s1988_s17 + $0x18] sm:$0xff] %v1271_v26 }
 0x305   : > { %v1025_v36 = vpop.f32.mrb[8].mxu0  ;;  %v1068_v37 = vpop.f32.mrb[8].mxu1 }
 0x306   : > { %v1027_v39 = vpop.f32.mrb[9].mxu0  ;;  %v1070_v40 = vpop.f32.mrb[9].mxu1 }
 0x307   : > { %v1029_v43 = vpop.f32.mrb[10].mxu0  ;;  %v1072_v45 = vpop.f32.mrb[10].mxu1 }
 0x308   : > { %v1081_v47 = vpack.c.bf16 %v1029_v43, %v1025_v36  ;;  %v1083_v44 = vpack.c.bf16 %v1072_v45, %v1068_v37  ;;  %v1031_v49 = vpop.f32.mrb[11].mxu0  ;;  %v1074_v50 = vpop.f32.mrb[11].mxu1 }
 0x309   : > { %v1082_v51 = vpack.c.bf16 %v1031_v49, %v1027_v39  ;;  %v1084_v52 = vpack.c.bf16 %v1074_v50, %v1070_v40 }
 0x30a   : > { %v1196_v53 = vadd.bf16 %v1170_v41, %v1081_v47  ;;  %v1198_v54 = vadd.bf16 %v1184_v42, %v1083_v44 }
 0x30b   : > { %v1197_v55 = vadd.bf16 %v1177_v46, %v1082_v51  ;;  %v1199_v56 = vadd.bf16 %v1191_v38, %v1084_v52 }
 0x30c   : > { %v1204_v57 = vmul.bf16 1009007652, %v1196_v53  ;;  %v1206_v58 = vmul.bf16 1009007652, %v1198_v54 }
 0x30d   : > { %v1205_v59 = vmul.bf16 1009007652, %v1197_v55  ;;  %v1207_v60 = vmul.bf16 1009007652, %v1199_v56 }
 0x30e   : > { %v1212_v61 = vmax.bf16 %v1204_v57, %v1196_v53  ;;  %v1214_v62 = vmax.bf16 %v1206_v58, %v1198_v54 }
 0x30f   : > { %v1213_v63 = vmax.bf16 %v1205_v59, %v1197_v55  ;;  %v1215_v48 = vmax.bf16 %v1207_v60, %v1199_v56 }
 0x311   : > { %v1497_v0 = vcombine.low %v1212_v61, %v1213_v63  ;;  %v1501_v1 = vcombine.high %v1212_v61, %v1213_v63  ;;  %v1498_v2 = vcombine.low %v1214_v62, %v1215_v48  ;;  %v1502_v3 = vcombine.high %v1214_v62, %v1215_v48 }
 0x313   : > { %v1258_v4 = vmax.bf16 %v1501_v1, %v1497_v0  ;;  %v1259_v5 = vmax.bf16 %v1502_v3, %v1498_v2 }
 0x315   : > { %v1272_v6 = vunpack.c.l.bf16 %v1258_v4  ;;  %v1273_v7 = vunpack.c.h.bf16 %v1258_v4  ;;  %v1274_v8 = vunpack.c.l.bf16 %v1259_v5  ;;  %v1275_v9 = vunpack.c.h.bf16 %v1259_v5 }
 0x317   : > { %1288 = vst [vmem:[%s1988_s17 + $0x20] sm:$0xff] %v1272_v6  ;;  %1289 = vst [vmem:[%s1988_s17 + $0x28] sm:$0xff] %v1273_v7 }
 0x318   : > { %1290 = vst [vmem:[%s1988_s17 + $0x30] sm:$0xff] %v1274_v8  ;;  %1291 = vst [vmem:[%s1988_s17 + $0x38] sm:$0xff] %v1275_v9 }
 0x319   : > { %1693 = shalt.err (!%p1690_p6)
}
 0x31a   : > { %s1694_s8 = scalar_lea.hbm %s2003_s23, 1024  ;;  %s1698_s12 = scalar_lea.hbm %s2063_s7, 2048 }
 0x31b   : > { %p1695_p7 = scmp.ne.s32.totalorder %s2003_s23, %s1694_s8  ;;  %p1699_p0 = scmp.lt.u32.totalorder %s2003_s23, %s2063_s7 }
 0x31c   : > { %p1700_p1 = scmp.lt.u32.totalorder %s1698_s12, %s1694_s8  ;;  %p1702_p13 = scmp.lt.u32.totalorder %s1694_s8, %s2003_s23 }
 0x31d   : > { %p1696_p9 = pnand %p1695_p7, %p2077_p8 }
 0x31e   : > { %p1701_p4 = por %p1700_p1, %p1699_p0 }
 0x31f   : > { %p1697_p12 = pneg %p1696_p9 }
 0x320   : > { %p1703_p10 = por %p1702_p13, %p1701_p4 }
 0x322   : > { %p1704_p11 = pnand %p1703_p10, %p1697_p12 }
 0x324   : > { %1707 = shalt.err (!%p1704_p11)
}
 0x325   : > { %1543 = dma.vmem_to_hbm [thread:$0]  (%p2077_p8), %s2005_s18, 1024, %s2003_s23, %s1293_s27  }
 0x326 PF: > { %p1560_p2 = scmp.ge.s32.totalorder %s1766_s29, 2  ;;  %s1321_s9 = sand.u32 1, %s1746_s24  }
 0x327   : > { %p2078_p3 = scmp.ne.s32.totalorder %s2071_s13, 0  ;;  %s1322_s22 = scalar_lea.sflag [#allocation4], %s1321_s9 }
 0x329   : > { %p1553_p5 = pnand %p1560_p2, %p2078_p3 }
 0x32b   : > { %1741 = dma.done.wait (!%p1553_p5), %s1322_s22, 1024  }
 0x32c   : > { %1743 = vsyncadd (!%p1553_p5), %s1322_s22, 4294966272  ;;  %s22_s29 = sadd.s32 1, %s1766_s29   ;;  %s2079_s11 = sld [smem:[#allocation11_spill]] }
 0x32d   : > { %p19_p6 = scmp.ge.s32.totalorder %s22_s29, 4   ;;  %s2080_s24 = smov %s1750_s25 }
 0x32e   : > { %s2081_s25 = smov %s1754_s26  ;;  %s2082_s26 = smov %s1870_s14 }
 0x32f   : > { %s2083_s27 = smov %s1762_s28  ;;  %21 = sbr.rel (!%p19_p6) target bundleno = 6 (0x6), region = 96 }
 0x332   : > { %s2084_s28 = smov %s2079_s11 }
 0x336   :  { %1327 = vsyncpa [#allocation3], 1 }
 0x337   :  { %1329 = vsyncpa [#allocation3 + $0x1], 1 }
 0x338   :  { %1330 = vsyncpa [#allocation6], 1 }
 0x339   :  { %1331 = vsyncpa [#allocation4], 1 }
 0x33a   :  { %1333 = vsyncpa [#allocation4 + $0x1], 1 }

</bundles_post_ra>
